<compile_context>
chip_gen: v7x
topology: tpu7x:2x2x1
jax: 0.10.0
libtpu: 0.0.40
codegen_flags: <defaults>
</compile_context>

<pallas_src>
import functools

import jax
import jax.numpy as jnp
from jax.experimental import pallas as pl
from jax.experimental.pallas import tpu as pltpu

IN_FEATURES = 773
F_PAD = 896            # next multiple of 128 >= 773
H1, H2, H3 = 512, 256, 128
BLOCK_B = 256          # batch tile: sized for v7x's 64 MiB VMEM (32 MiB scoped)


def _round_up(n, m):
    return ((n + m - 1) // m) * m


def chess_mlp_kernel(x_ref, w1_ref, b1_ref, w2_ref, b2_ref,
                     w3_ref, b3_ref, w4_ref, b4_ref, o_ref):
    # Layer 1: (TILE_B, 896) @ (896, 512), bf16 in / f32 accumulate, + bias, ReLU.
    h = jnp.dot(x_ref[...], w1_ref[...], preferred_element_type=jnp.float32)
    h = jnp.maximum(h + b1_ref[...], 0.0)
    # Layer 2: (TILE_B, 512) @ (512, 256)
    h = jnp.dot(h.astype(jnp.bfloat16), w2_ref[...],
                preferred_element_type=jnp.float32)
    h = jnp.maximum(h + b2_ref[...], 0.0)
    # Layer 3: (TILE_B, 256) @ (256, 128)
    h = jnp.dot(h.astype(jnp.bfloat16), w3_ref[...],
                preferred_element_type=jnp.float32)
    h = jnp.maximum(h + b3_ref[...], 0.0)
    # Layer 4 (128 -> 1) on VPU + XLU: broadcast multiply then lane reduction.
    s = jnp.sum(h * w4_ref[...], axis=-1, keepdims=True) + b4_ref[...]
    # forward() returns -network(x)
    o_ref[...] = -jnp.tanh(s)


@jax.jit
def chess_model_forward(x, params):
    (w1, b1), (w2, b2), (w3, b3), (w4, b4) = params
    B, F = x.shape
    assert F == IN_FEATURES

    # Feature padding 773 -> 896 (zeros); zero rows in W1 keep results identical.
    x_p = jnp.pad(x, ((0, 0), (0, F_PAD - F))).astype(jnp.bfloat16)
    w1_p = jnp.pad(w1, ((0, F_PAD - F), (0, 0))).astype(jnp.bfloat16)
    w2_b = w2.astype(jnp.bfloat16)
    w3_b = w3.astype(jnp.bfloat16)
    w4_row = w4.reshape(1, H3).astype(jnp.float32)   # (128,1) column -> (1,128) row

    # Batch tiling (tile must be a multiple of 8).
    tile_b = min(BLOCK_B, _round_up(B, 8))
    b_pad = _round_up(B, tile_b)
    if b_pad != B:
        x_p = jnp.pad(x_p, ((0, b_pad - B), (0, 0)))
    grid = (b_pad // tile_b,)

    weight_bytes = (F_PAD * H1 + H1 * H2 + H2 * H3) * 2 + H3 * 4
    bias_bytes = (H1 + H2 + H3 + 1) * 4
    cost = pl.CostEstimate(
        flops=2 * b_pad * (F_PAD * H1 + H1 * H2 + H2 * H3 + H3),
        transcendentals=b_pad,
        bytes_accessed=b_pad * F_PAD * 2 + weight_bytes + bias_bytes + b_pad * 4,
    )

    out = pl.pallas_call(
        chess_mlp_kernel,
        out_shape=jax.ShapeDtypeStruct((b_pad, 1), jnp.float32),
        grid=grid,
        in_specs=[
            pl.BlockSpec((tile_b, F_PAD), lambda i: (i, 0)),   # x: streams per tile
            pl.BlockSpec((F_PAD, H1), lambda i: (0, 0)),       # weights/biases:
            pl.BlockSpec((1, H1), lambda i: (0, 0)),           # constant block index
            pl.BlockSpec((H1, H2), lambda i: (0, 0)),          # -> resident in VMEM
            pl.BlockSpec((1, H2), lambda i: (0, 0)),
            pl.BlockSpec((H2, H3), lambda i: (0, 0)),
            pl.BlockSpec((1, H3), lambda i: (0, 0)),
            pl.BlockSpec((1, H3), lambda i: (0, 0)),
            pl.BlockSpec((1, 1), lambda i: (0, 0)),
        ],
        out_specs=pl.BlockSpec((tile_b, 1), lambda i: (i, 0)),
        compiler_params=pltpu.CompilerParams(
            dimension_semantics=("parallel",),
        ),
        cost_estimate=cost,
    )(x_p, w1_p, b1, w2_b, b2, w3_b, b3, w4_row, b4)

    return out[:B]


def init_params(key):
    """Deterministic init mimicking PyTorch nn.Linear default (uniform +/- 1/sqrt(fan_in)).

    Weights are stored (in_features, out_features), biases (1, out_features).
    """
    dims = [(IN_FEATURES, H1), (H1, H2), (H2, H3), (H3, 1)]
    params = []
    for (fan_in, fan_out) in dims:
        key, kw, kb = jax.random.split(key, 3)
        bound = 1.0 / jnp.sqrt(fan_in)
        w = jax.random.uniform(kw, (fan_in, fan_out), jnp.float32, -bound, bound)
        b = jax.random.uniform(kb, (1, fan_out), jnp.float32, -bound, bound)
        params.append((w, b))
    return params


def reference_forward_f32(x, params):
    """Pure-f32 reference matching the PyTorch module."""
    h = x
    for i, (w, b) in enumerate(params):
        h = h @ w + b
        if i < 3:
            h = jnp.maximum(h, 0.0)
    return -jnp.tanh(h)


def reference_forward_bf16(x, params):
    """Reference mirroring the kernel's numerics (bf16 MXU inputs, f32 accumulation)."""
    (w1, b1), (w2, b2), (w3, b3), (w4, b4) = params
    h = jnp.dot(x.astype(jnp.bfloat16), w1.astype(jnp.bfloat16),
                preferred_element_type=jnp.float32)
    h = jnp.maximum(h + b1, 0.0)
    h = jnp.dot(h.astype(jnp.bfloat16), w2.astype(jnp.bfloat16),
                preferred_element_type=jnp.float32)
    h = jnp.maximum(h + b2, 0.0)
    h = jnp.dot(h.astype(jnp.bfloat16), w3.astype(jnp.bfloat16),
                preferred_element_type=jnp.float32)
    h = jnp.maximum(h + b3, 0.0)
    s = jnp.sum(h * w4.reshape(1, H3), axis=-1, keepdims=True) + b4
    return -jnp.tanh(s)


if __name__ == "__main__":
    key = jax.random.PRNGKey(0)
    kx, kp = jax.random.split(key)

    batch = 4
    x = jax.random.uniform(kx, (batch, IN_FEATURES), jnp.float32, 0.0, 1.0)
    params = init_params(kp)

    out = jax.block_until_ready(chess_model_forward(x, params))

    assert out.shape == (batch, 1)
    ref_bf16 = reference_forward_bf16(x, params)
    ref_f32 = reference_forward_f32(x, params)
    assert jnp.allclose(out, ref_bf16, atol=1e-3, rtol=1e-3), (out, ref_bf16)
    assert jnp.allclose(out, ref_f32, atol=5e-2), (out, ref_f32)

    print("KERNEL_OK")
</pallas_src>

<mosaic_0001>
module attributes {stable_mosaic.version = 11 : i64} {
  func.func @chess_mlp_kernel(%arg0: i32, %arg1: memref<8x896xbf16, #tpu.memory_space<vmem>>, %arg2: memref<896x512xbf16, #tpu.memory_space<vmem>>, %arg3: memref<1x512xf32, #tpu.memory_space<vmem>>, %arg4: memref<512x256xbf16, #tpu.memory_space<vmem>>, %arg5: memref<1x256xf32, #tpu.memory_space<vmem>>, %arg6: memref<256x128xbf16, #tpu.memory_space<vmem>>, %arg7: memref<1x128xf32, #tpu.memory_space<vmem>>, %arg8: memref<1x128xf32, #tpu.memory_space<vmem>>, %arg9: memref<1x1xf32, #tpu.memory_space<vmem>>, %arg10: memref<8x1xf32, #tpu.memory_space<vmem>>) attributes {dimension_semantics = [#tpu.dimension_semantics<parallel>], iteration_bounds = array<i64: 1>, scalar_prefetch = 0 : i64, scratch_operands = 0 : i64, tpu.core_type = #tpu.core_type<tc>, window_params = [{transform_indices = @transform_0, window_bounds = array<i64: 8, 896>}, {pipeline_mode = #tpu.pipeline_mode<synchronous>, transform_indices = @transform_1, window_bounds = array<i64: 896, 512>}, {pipeline_mode = #tpu.pipeline_mode<synchronous>, transform_indices = @transform_2, window_bounds = array<i64: 1, 512>}, {pipeline_mode = #tpu.pipeline_mode<synchronous>, transform_indices = @transform_3, window_bounds = array<i64: 512, 256>}, {pipeline_mode = #tpu.pipeline_mode<synchronous>, transform_indices = @transform_4, window_bounds = array<i64: 1, 256>}, {pipeline_mode = #tpu.pipeline_mode<synchronous>, transform_indices = @transform_5, window_bounds = array<i64: 256, 128>}, {pipeline_mode = #tpu.pipeline_mode<synchronous>, transform_indices = @transform_6, window_bounds = array<i64: 1, 128>}, {pipeline_mode = #tpu.pipeline_mode<synchronous>, transform_indices = @transform_7, window_bounds = array<i64: 1, 128>}, {pipeline_mode = #tpu.pipeline_mode<synchronous>, transform_indices = @transform_8, window_bounds = array<i64: 1, 1>}, {transform_indices = @transform_9, window_bounds = array<i64: 8, 1>}]} {
    %c0 = arith.constant 0 : index
    %c0_0 = arith.constant 0 : index
    %0 = vector.load %arg1[%c0, %c0_0] : memref<8x896xbf16, #tpu.memory_space<vmem>>, vector<8x896xbf16>
    %c0_1 = arith.constant 0 : index
    %c0_2 = arith.constant 0 : index
    %1 = vector.load %arg2[%c0_1, %c0_2] : memref<896x512xbf16, #tpu.memory_space<vmem>>, vector<896x512xbf16>
    %cst = arith.constant dense<0.000000e+00> : vector<8x512xf32>
    %2 = tpu.matmul %0, %1, %cst {dimension_numbers = #tpu.dot_dimension_numbers<[1], [0], [0], [1], [0, 0, 1, 1], [], []>} : vector<8x896xbf16>, vector<896x512xbf16>, vector<8x512xf32> -> vector<8x512xf32>
    %c0_3 = arith.constant 0 : index
    %c0_4 = arith.constant 0 : index
    %3 = vector.load %arg3[%c0_3, %c0_4] : memref<1x512xf32, #tpu.memory_space<vmem>>, vector<1x512xf32>
    %4 = vector.broadcast %3 : vector<1x512xf32> to vector<8x512xf32>
    %5 = arith.addf %2, %4 : vector<8x512xf32>
    %cst_5 = arith.constant 0.000000e+00 : f32
    %6 = vector.broadcast %cst_5 : f32 to vector<8x512xf32>
    %7 = arith.maximumf %5, %6 : vector<8x512xf32>
    %8 = arith.truncf %7 : vector<8x512xf32> to vector<8x512xbf16>
    %c0_6 = arith.constant 0 : index
    %c0_7 = arith.constant 0 : index
    %9 = vector.load %arg4[%c0_6, %c0_7] : memref<512x256xbf16, #tpu.memory_space<vmem>>, vector<512x256xbf16>
    %cst_8 = arith.constant dense<0.000000e+00> : vector<8x256xf32>
    %10 = tpu.matmul %8, %9, %cst_8 {dimension_numbers = #tpu.dot_dimension_numbers<[1], [0], [0], [1], [0, 0, 1, 1], [], []>} : vector<8x512xbf16>, vector<512x256xbf16>, vector<8x256xf32> -> vector<8x256xf32>
    %c0_9 = arith.constant 0 : index
    %c0_10 = arith.constant 0 : index
    %11 = vector.load %arg5[%c0_9, %c0_10] : memref<1x256xf32, #tpu.memory_space<vmem>>, vector<1x256xf32>
    %12 = vector.broadcast %11 : vector<1x256xf32> to vector<8x256xf32>
    %13 = arith.addf %10, %12 : vector<8x256xf32>
    %cst_11 = arith.constant 0.000000e+00 : f32
    %14 = vector.broadcast %cst_11 : f32 to vector<8x256xf32>
    %15 = arith.maximumf %13, %14 : vector<8x256xf32>
    %16 = arith.truncf %15 : vector<8x256xf32> to vector<8x256xbf16>
    %c0_12 = arith.constant 0 : index
    %c0_13 = arith.constant 0 : index
    %17 = vector.load %arg6[%c0_12, %c0_13] : memref<256x128xbf16, #tpu.memory_space<vmem>>, vector<256x128xbf16>
    %cst_14 = arith.constant dense<0.000000e+00> : vector<8x128xf32>
    %18 = tpu.matmul %16, %17, %cst_14 {dimension_numbers = #tpu.dot_dimension_numbers<[1], [0], [0], [1], [0, 0, 1, 1], [], []>} : vector<8x256xbf16>, vector<256x128xbf16>, vector<8x128xf32> -> vector<8x128xf32>
    %c0_15 = arith.constant 0 : index
    %c0_16 = arith.constant 0 : index
    %19 = vector.load %arg7[%c0_15, %c0_16] : memref<1x128xf32, #tpu.memory_space<vmem>>, vector<1x128xf32>
    %20 = vector.broadcast %19 : vector<1x128xf32> to vector<8x128xf32>
    %21 = arith.addf %18, %20 : vector<8x128xf32>
    %cst_17 = arith.constant 0.000000e+00 : f32
    %22 = vector.broadcast %cst_17 : f32 to vector<8x128xf32>
    %23 = arith.maximumf %21, %22 : vector<8x128xf32>
    %c0_18 = arith.constant 0 : index
    %c0_19 = arith.constant 0 : index
    %24 = vector.load %arg8[%c0_18, %c0_19] : memref<1x128xf32, #tpu.memory_space<vmem>>, vector<1x128xf32>
    %25 = vector.broadcast %24 : vector<1x128xf32> to vector<8x128xf32>
    %26 = arith.mulf %23, %25 : vector<8x128xf32>
    %cst_20 = arith.constant dense<0.000000e+00> : vector<8xf32>
    %27 = vector.multi_reduction <add>, %26, %cst_20 [1] : vector<8x128xf32> to vector<8xf32>
    %28 = vector.shape_cast %27 : vector<8xf32> to vector<8x1xf32>
    %c0_21 = arith.constant 0 : index
    %c0_22 = arith.constant 0 : index
    %29 = vector.load %arg9[%c0_21, %c0_22] : memref<1x1xf32, #tpu.memory_space<vmem>>, vector<1x1xf32>
    %30 = vector.broadcast %29 : vector<1x1xf32> to vector<8x1xf32>
    %31 = arith.addf %28, %30 : vector<8x1xf32>
    %32 = math.tanh %31 : vector<8x1xf32>
    %cst_23 = arith.constant 0.000000e+00 : f32
    %33 = vector.broadcast %cst_23 : f32 to vector<8x1xf32>
    %34 = arith.subf %33, %32 : vector<8x1xf32>
    %c0_24 = arith.constant 0 : index
    %c0_25 = arith.constant 0 : index
    %35 = vector.load %arg10[%c0_24, %c0_25] : memref<8x1xf32, #tpu.memory_space<vmem>>, vector<8x1xf32>
    tpu.vector_store %arg10[%c0_24, %c0_25], %34 {strides = array<i32>} : memref<8x1xf32, #tpu.memory_space<vmem>>, vector<8x1xf32>,
    return
  }
  func.func @transform_0(%arg0: i32) -> (i32, i32) {
    %c0_i32 = arith.constant 0 : i32
    %c0_i32_0 = arith.constant 0 : i32
    return %arg0, %c0_i32 : i32, i32
  }
  func.func @transform_1(%arg0: i32) -> (i32, i32) {
    %c0_i32 = arith.constant 0 : i32
    %c0_i32_0 = arith.constant 0 : i32
    %c0_i32_1 = arith.constant 0 : i32
    return %c0_i32, %c0_i32_0 : i32, i32
  }
  func.func @transform_2(%arg0: i32) -> (i32, i32) {
    %c0_i32 = arith.constant 0 : i32
    %c0_i32_0 = arith.constant 0 : i32
    %c0_i32_1 = arith.constant 0 : i32
    return %c0_i32, %c0_i32_0 : i32, i32
  }
  func.func @transform_3(%arg0: i32) -> (i32, i32) {
    %c0_i32 = arith.constant 0 : i32
    %c0_i32_0 = arith.constant 0 : i32
    %c0_i32_1 = arith.constant 0 : i32
    return %c0_i32, %c0_i32_0 : i32, i32
  }
  func.func @transform_4(%arg0: i32) -> (i32, i32) {
    %c0_i32 = arith.constant 0 : i32
    %c0_i32_0 = arith.constant 0 : i32
    %c0_i32_1 = arith.constant 0 : i32
    return %c0_i32, %c0_i32_0 : i32, i32
  }
  func.func @transform_5(%arg0: i32) -> (i32, i32) {
    %c0_i32 = arith.constant 0 : i32
    %c0_i32_0 = arith.constant 0 : i32
    %c0_i32_1 = arith.constant 0 : i32
    return %c0_i32, %c0_i32_0 : i32, i32
  }
  func.func @transform_6(%arg0: i32) -> (i32, i32) {
    %c0_i32 = arith.constant 0 : i32
    %c0_i32_0 = arith.constant 0 : i32
    %c0_i32_1 = arith.constant 0 : i32
    return %c0_i32, %c0_i32_0 : i32, i32
  }
  func.func @transform_7(%arg0: i32) -> (i32, i32) {
    %c0_i32 = arith.constant 0 : i32
    %c0_i32_0 = arith.constant 0 : i32
    %c0_i32_1 = arith.constant 0 : i32
    return %c0_i32, %c0_i32_0 : i32, i32
  }
  func.func @transform_8(%arg0: i32) -> (i32, i32) {
    %c0_i32 = arith.constant 0 : i32
    %c0_i32_0 = arith.constant 0 : i32
    %c0_i32_1 = arith.constant 0 : i32
    return %c0_i32, %c0_i32_0 : i32, i32
  }
  func.func @transform_9(%arg0: i32) -> (i32, i32) {
    %c0_i32 = arith.constant 0 : i32
    %c0_i32_0 = arith.constant 0 : i32
    return %arg0, %c0_i32 : i32, i32
  }
}

</mosaic_0001>

<bundles_post_ra>
// kernel: chess_model_forward.1
= control target key start
LH: loop header
LB: loop body
LE: loop exit
PB: predicated region body
PF: predicated region fallthrough
CT: control target
= control target key end

     0   :  { %vm2444_vm0 = vcmask 7168   ;;  %s4325_s1 = inlined_call_operand.vmem [shape: bf16[896,512], index: 1, kind: input, shape index: {}]   ;;  %s4326_s0 = inlined_call_operand.vmem [shape: bf16[8,896], index: 0, kind: input, shape index: {}]   ;;  %s4327_s3 = inlined_call_operand.vmem [shape: bf16[512,256], index: 3, kind: input, shape index: {}]   ;;  %s4328_s2 = inlined_call_operand.vmem [shape: f32[1,512], index: 2, kind: input, shape index: {}]   ;;  %s4329_s5 = inlined_call_operand.vmem [shape: bf16[256,128], index: 5, kind: input, shape index: {}]   ;;  %s4330_s4 = inlined_call_operand.vmem [shape: f32[1,256], index: 4, kind: input, shape index: {}]   ;;  %s4331_s8 = inlined_call_operand.<no memory space> [shape: f32[1,1], index: 8, kind: input, shape index: {}]   ;;  %s4332_s6 = inlined_call_operand.vmem [shape: f32[1,128], index: 6, kind: input, shape index: {}]   ;;  %s4333_s7 = inlined_call_operand.vmem [shape: f32[1,128], index: 7, kind: input, shape index: {}]   ;;  %s4334_s9 = inlined_call_operand.vmem [shape: f32[8,1], index: 9, kind: output, shape index: {}]  }
   0x1   :  { %v2819_v0 = vld [vmem:[%s4325_s1 + $0x4] ss:$16 sps:$4 sm:$0xff]   ;;  %v2823_v2 = vld [vmem:[%s4325_s1] ss:$16 sps:$4 sm:$0xff]   ;;  %v36_v48 = vld [vmem:[%s4326_s0 + $0x8] sm:$0xff] }
   0x2   :  { %v2821_v1 = vld [vmem:[%s4325_s1 + $0x204] ss:$16 sps:$4 sm:$0xff]   ;;  %1430 = vmatprep.subr.bf16.mxu1 %v2819_v0  ;;  %v2824_v3 = vld [vmem:[%s4325_s1 + $0x200] ss:$16 sps:$4 sm:$0xff]   ;;  %v3479_v51 = vcombine.high %v36_v48, %v36_v48 }
   0x3   :  { %1471 = vmatprep.subr.bf16.mxu0 %v2821_v1  ;;  %v2825_v4 = vld [vmem:[%s4325_s1 + $0x24] ss:$16 sps:$4 sm:$0xff]   ;;  %1431 = vmatpush1.bf16.msra.mxu1 %v2823_v2  ;;  %v2829_v6 = vld [vmem:[%s4325_s1 + $0x20] ss:$16 sps:$4 sm:$0xff]  }
   0x4   :  { %1472 = vmatpush1.bf16.msra.mxu0 %v2824_v3  ;;  %v2827_v5 = vld [vmem:[%s4325_s1 + $0x224] ss:$16 sps:$4 sm:$0xff]   ;;  %1432 = vmatprep.subr.bf16.mxu1 %v2825_v4  ;;  %v2830_v7 = vld [vmem:[%s4325_s1 + $0x220] ss:$16 sps:$4 sm:$0xff]  }
   0x5   :  { %1473 = vmatprep.subr.bf16.mxu0 %v2827_v5  ;;  %v2831_v8 = vld [vmem:[%s4325_s1 + $0x44] ss:$16 sps:$4 sm:$0xff]   ;;  %v2835_v10 = vld [vmem:[%s4325_s1 + $0x40] ss:$16 sps:$4 sm:$0xff]   ;;  %1503 = vmatprep.mubr.bf16.mxu0 %v3479_v51  ;;  %v2924_v5 = vld [vmem:[%s4325_s1 + $0xc] ss:$16 sps:$4 sm:$0xff]  }
   0x6   :  { %v2833_v9 = vld [vmem:[%s4325_s1 + $0x244] ss:$16 sps:$4 sm:$0xff]   ;;  %v2836_v11 = vld [vmem:[%s4325_s1 + $0x240] ss:$16 sps:$4 sm:$0xff]  }
   0x7   :  { %1433 = vmatpush1.bf16.msra.mxu1 %v2829_v6  ;;  %v2837_v12 = vld [vmem:[%s4325_s1 + $0x64] ss:$16 sps:$4 sm:$0xff]   ;;  %v2841_v14 = vld [vmem:[%s4325_s1 + $0x60] ss:$16 sps:$4 sm:$0xff]  }
   0x8   :  { %1474 = vmatpush1.bf16.msra.mxu0 %v2830_v7  ;;  %1434 = vmatprep.subr.bf16.mxu1 %v2831_v8  ;;  %v2839_v13 = vld [vmem:[%s4325_s1 + $0x264] ss:$16 sps:$4 sm:$0xff]   ;;  %v2842_v15 = vld [vmem:[%s4325_s1 + $0x260] ss:$16 sps:$4 sm:$0xff]   ;;  %v3539_v7 = vcombine.low %v36_v48, %v36_v48 }
   0x9   :  { %1475 = vmatprep.subr.bf16.mxu0 %v2833_v9  ;;  %v2843_v16 = vld [vmem:[%s4325_s1 + $0x84] ss:$16 sps:$4 sm:$0xff]   ;;  %v2847_v18 = vld [vmem:[%s4325_s1 + $0x80] ss:$16 sps:$4 sm:$0xff]   ;;  %v2922_v9 = vld [vmem:[%s4325_s1 + $0x8] ss:$16 sps:$4 sm:$0xff]  }
   0xa   :  { %v2845_v17 = vld [vmem:[%s4325_s1 + $0x284] ss:$16 sps:$4 sm:$0xff]   ;;  %v2848_v19 = vld [vmem:[%s4325_s1 + $0x280] ss:$16 sps:$4 sm:$0xff]  }
   0xb   :  { %1435 = vmatpush1.bf16.msra.mxu1 %v2835_v10  ;;  %v2849_v20 = vld [vmem:[%s4325_s1 + $0xa4] ss:$16 sps:$4 sm:$0xff]   ;;  %v2853_v22 = vld [vmem:[%s4325_s1 + $0xa0] ss:$16 sps:$4 sm:$0xff]  }
   0xc   :  { %1476 = vmatpush1.bf16.msra.mxu0 %v2836_v11  ;;  %1436 = vmatprep.subr.bf16.mxu1 %v2837_v12  ;;  %v2851_v21 = vld [vmem:[%s4325_s1 + $0x2a4] ss:$16 sps:$4 sm:$0xff]   ;;  %v2854_v23 = vld [vmem:[%s4325_s1 + $0x2a0] ss:$16 sps:$4 sm:$0xff]   ;;  %v2930_v11 = vld [vmem:[%s4325_s1 + $0x2c] ss:$16 sps:$4 sm:$0xff]  }
   0xd   :  { %1477 = vmatprep.subr.bf16.mxu0 %v2839_v13  ;;  %v2855_v24 = vld [vmem:[%s4325_s1 + $0xc4] ss:$16 sps:$4 sm:$0xff]   ;;  %v2859_v26 = vld [vmem:[%s4325_s1 + $0xc0] ss:$16 sps:$4 sm:$0xff]   ;;  %v2928_v13 = vld [vmem:[%s4325_s1 + $0x28] ss:$16 sps:$4 sm:$0xff]  }
   0xe   :  { %v2857_v25 = vld [vmem:[%s4325_s1 + $0x2c4] ss:$16 sps:$4 sm:$0xff]   ;;  %v2860_v27 = vld [vmem:[%s4325_s1 + $0x2c0] ss:$16 sps:$4 sm:$0xff]  }
   0xf   :  { %1437 = vmatpush1.bf16.msra.mxu1 %v2841_v14  ;;  %v2861_v28 = vld [vmem:[%s4325_s1 + $0xe4] ss:$16 sps:$4 sm:$0xff]   ;;  %v2865_v30 = vld [vmem:[%s4325_s1 + $0xe0] ss:$16 sps:$4 sm:$0xff]  }
  0x10   :  { %1478 = vmatpush1.bf16.msra.mxu0 %v2842_v15  ;;  %1438 = vmatprep.subr.bf16.mxu1 %v2843_v16  ;;  %v2863_v29 = vld [vmem:[%s4325_s1 + $0x2e4] ss:$16 sps:$4 sm:$0xff]   ;;  %v2866_v31 = vld [vmem:[%s4325_s1 + $0x2e0] ss:$16 sps:$4 sm:$0xff]   ;;  %v2936_v15 = vld [vmem:[%s4325_s1 + $0x4c] ss:$16 sps:$4 sm:$0xff]  }
  0x11   :  { %1479 = vmatprep.subr.bf16.mxu0 %v2845_v17  ;;  %v2867_v32 = vld [vmem:[%s4325_s1 + $0x104] ss:$16 sps:$4 sm:$0xff]   ;;  %v2871_v34 = vld [vmem:[%s4325_s1 + $0x100] ss:$16 sps:$4 sm:$0xff]   ;;  %v2934_v17 = vld [vmem:[%s4325_s1 + $0x48] ss:$16 sps:$4 sm:$0xff]  }
  0x12   :  { %v2869_v33 = vld [vmem:[%s4325_s1 + $0x304] ss:$16 sps:$4 sm:$0xff]   ;;  %v2872_v35 = vld [vmem:[%s4325_s1 + $0x300] ss:$16 sps:$4 sm:$0xff]  }
  0x13   :  { %1439 = vmatpush1.bf16.msra.mxu1 %v2847_v18  ;;  %v2873_v36 = vld [vmem:[%s4325_s1 + $0x124] ss:$16 sps:$4 sm:$0xff]   ;;  %v2877_v38 = vld [vmem:[%s4325_s1 + $0x120] ss:$16 sps:$4 sm:$0xff]  }
  0x14   :  { %1480 = vmatpush1.bf16.msra.mxu0 %v2848_v19  ;;  %1440 = vmatprep.subr.bf16.mxu1 %v2849_v20  ;;  %v2875_v37 = vld [vmem:[%s4325_s1 + $0x324] ss:$16 sps:$4 sm:$0xff]   ;;  %v2878_v39 = vld [vmem:[%s4325_s1 + $0x320] ss:$16 sps:$4 sm:$0xff]   ;;  %v2942_v19 = vld [vmem:[%s4325_s1 + $0x6c] ss:$16 sps:$4 sm:$0xff]  }
  0x15   :  { %1481 = vmatprep.subr.bf16.mxu0 %v2851_v21  ;;  %v2879_v40 = vld [vmem:[%s4325_s1 + $0x144] ss:$16 sps:$4 sm:$0xff]   ;;  %v2883_v42 = vld [vmem:[%s4325_s1 + $0x140] ss:$16 sps:$4 sm:$0xff]   ;;  %v2940_v21 = vld [vmem:[%s4325_s1 + $0x68] ss:$16 sps:$4 sm:$0xff]  }
  0x16   :  { %v2881_v41 = vld [vmem:[%s4325_s1 + $0x344] ss:$16 sps:$4 sm:$0xff]   ;;  %v2884_v43 = vld [vmem:[%s4325_s1 + $0x340] ss:$16 sps:$4 sm:$0xff]  }
  0x17   :  { %1441 = vmatpush1.bf16.msra.mxu1 %v2853_v22  ;;  %v2885_v44 = vld [vmem:[%s4325_s1 + $0x164] ss:$16 sps:$4 sm:$0xff]   ;;  %v2889_v49 = vld [vmem:[%s4325_s1 + $0x160] ss:$16 sps:$4 sm:$0xff]  }
  0x18   :  { %1482 = vmatpush1.bf16.msra.mxu0 %v2854_v23  ;;  %1442 = vmatprep.subr.bf16.mxu1 %v2855_v24  ;;  %v2887_v45 = vld [vmem:[%s4325_s1 + $0x364] ss:$16 sps:$4 sm:$0xff]   ;;  %v2890_v50 = vld [vmem:[%s4325_s1 + $0x360] ss:$16 sps:$4 sm:$0xff]   ;;  %v2948_v23 = vld [vmem:[%s4325_s1 + $0x8c] ss:$16 sps:$4 sm:$0xff]  }
  0x19   :  { %1483 = vmatprep.subr.bf16.mxu0 %v2857_v25  ;;  %v35_v46 = vld [vmem:[%s4326_s0] sm:$0xff]  ;;  %v2946_v25 = vld [vmem:[%s4325_s1 + $0x88] ss:$16 sps:$4 sm:$0xff]  }
  0x1a   :  { %v3468_v47 = vcombine.high %v35_v46, %v35_v46  ;;  %v2891_v52 = vld [vmem:[%s4325_s1 + $0x184] ss:$16 sps:$4 sm:$0xff]   ;;  %v2895_v54 = vld [vmem:[%s4325_s1 + $0x180] ss:$16 sps:$4 sm:$0xff]   ;;  %v3537_v6 = vcombine.low %v35_v46, %v35_v46 }
  0x1b   :  { %1443 = vmatpush1.bf16.msra.mxu1 %v2859_v26  ;;  %v2893_v53 = vld [vmem:[%s4325_s1 + $0x384] ss:$16 sps:$4 sm:$0xff]   ;;  %v2896_v55 = vld [vmem:[%s4325_s1 + $0x380] ss:$16 sps:$4 sm:$0xff]  }
  0x1c   :  { %1484 = vmatpush1.bf16.msra.mxu0 %v2860_v27  ;;  %1444 = vmatprep.subr.bf16.mxu1 %v2861_v28  ;;  %v2897_v56 = vld [vmem:[%s4325_s1 + $0x1a4] ss:$16 sps:$4 sm:$0xff]   ;;  %v2901_v58 = vld [vmem:[%s4325_s1 + $0x1a0] ss:$16 sps:$4 sm:$0xff]   ;;  %v2954_v27 = vld [vmem:[%s4325_s1 + $0xac] ss:$16 sps:$4 sm:$0xff]  }
  0x1d   :  { %1485 = vmatprep.subr.bf16.mxu0 %v2863_v29  ;;  %1462 = vmatprep.mubr.bf16.mxu1 %v3468_v47  ;;  %v2899_v57 = vld [vmem:[%s4325_s1 + $0x3a4] ss:$16 sps:$4 sm:$0xff]   ;;  %v2902_v59 = vld [vmem:[%s4325_s1 + $0x3a0] ss:$16 sps:$4 sm:$0xff]   ;;  %v2952_v29 = vld [vmem:[%s4325_s1 + $0xa8] ss:$16 sps:$4 sm:$0xff]  }
  0x1e   :  { %v2903_v60 = vld [vmem:[%s4325_s1 + $0x1c4] ss:$16 sps:$4 sm:$0xff]   ;;  %v2907_v62 = vld [vmem:[%s4325_s1 + $0x1c0] ss:$16 sps:$4 sm:$0xff]  }
  0x1f   :  { %1445 = vmatpush1.bf16.msra.mxu1 %v2865_v30  ;;  %v2905_v61 = vld [vmem:[%s4325_s1 + $0x3c4] ss:$16 sps:$4 sm:$0xff]   ;;  %v2908_v63 = vld [vmem:[%s4325_s1 + $0x3c0] ss:$16 sps:$4 sm:$0xff]  }
  0x20   :  { %1486 = vmatpush1.bf16.msra.mxu0 %v2866_v31  ;;  %1446 = vmatprep.subr.bf16.mxu1 %v2867_v32  ;;  %v2909_v0 = vld [vmem:[%s4325_s1 + $0x1e4] ss:$16 sps:$4 sm:$0xff]   ;;  %v2913_v2 = vld [vmem:[%s4325_s1 + $0x1e0] ss:$16 sps:$4 sm:$0xff]   ;;  %v2960_v31 = vld [vmem:[%s4325_s1 + $0xcc] ss:$16 sps:$4 sm:$0xff]  }
  0x21   :  { %1487 = vmatprep.subr.bf16.mxu0 %v2869_v33  ;;  %v2911_v1 = vld [vmem:[%s4325_s1 + $0x3e4] ss:$16 sps:$4 sm:$0xff]   ;;  %v2914_v3 = vld [vmem:[%s4325_s1 + $0x3e0] ss:$16 sps:$4 sm:$0xff]  }
  0x22   :  { %v2921_v4 = vld [vmem:[%s4325_s1 + $0x404] ss:$16 sps:$4 sm:$0xff]   ;;  %v2919_v8 = vld [vmem:[%s4325_s1 + $0x400] ss:$16 sps:$4 sm:$0xff]  }
  0x23   :  { %1447 = vmatpush1.bf16.msra.mxu1 %v2871_v34  ;;  %v2927_v10 = vld [vmem:[%s4325_s1 + $0x424] ss:$16 sps:$4 sm:$0xff]   ;;  %v2925_v12 = vld [vmem:[%s4325_s1 + $0x420] ss:$16 sps:$4 sm:$0xff]  }
  0x24   :  { %1488 = vmatpush1.bf16.msra.mxu0 %v2872_v35  ;;  %1448 = vmatprep.subr.bf16.mxu1 %v2873_v36  ;;  %v2933_v14 = vld [vmem:[%s4325_s1 + $0x444] ss:$16 sps:$4 sm:$0xff]   ;;  %v2931_v16 = vld [vmem:[%s4325_s1 + $0x440] ss:$16 sps:$4 sm:$0xff]   ;;  %v2958_v35 = vld [vmem:[%s4325_s1 + $0xc8] ss:$16 sps:$4 sm:$0xff]  }
  0x25   :  { %1489 = vmatprep.subr.bf16.mxu0 %v2875_v37  ;;  %v2939_v18 = vld [vmem:[%s4325_s1 + $0x464] ss:$16 sps:$4 sm:$0xff]   ;;  %v2937_v20 = vld [vmem:[%s4325_s1 + $0x460] ss:$16 sps:$4 sm:$0xff]   ;;  %v2966_v37 = vld [vmem:[%s4325_s1 + $0xec] ss:$16 sps:$4 sm:$0xff]  }
  0x26   :  { %v2945_v22 = vld [vmem:[%s4325_s1 + $0x484] ss:$16 sps:$4 sm:$0xff]   ;;  %v2943_v24 = vld [vmem:[%s4325_s1 + $0x480] ss:$16 sps:$4 sm:$0xff]  }
  0x27   :  { %1449 = vmatpush1.bf16.msra.mxu1 %v2877_v38  ;;  %v2951_v26 = vld [vmem:[%s4325_s1 + $0x4a4] ss:$16 sps:$4 sm:$0xff]   ;;  %v2949_v28 = vld [vmem:[%s4325_s1 + $0x4a0] ss:$16 sps:$4 sm:$0xff]  }
  0x28   :  { %1490 = vmatpush1.bf16.msra.mxu0 %v2878_v39  ;;  %1450 = vmatprep.subr.bf16.mxu1 %v2879_v40  ;;  %v2957_v30 = vld [vmem:[%s4325_s1 + $0x4c4] ss:$16 sps:$4 sm:$0xff]   ;;  %v2955_v33 = vld [vmem:[%s4325_s1 + $0x4c0] ss:$16 sps:$4 sm:$0xff]   ;;  %v2964_v39 = vld [vmem:[%s4325_s1 + $0xe8] ss:$16 sps:$4 sm:$0xff]  }
  0x29   :  { %1491 = vmatprep.subr.bf16.mxu0 %v2881_v41  ;;  %v3619_v32 = vld [vmem:[%s4326_s0 + $0x10] sm:$0xff]  ;;  %v2972_v41 = vld [vmem:[%s4325_s1 + $0x10c] ss:$16 sps:$4 sm:$0xff]  }
  0x2a   :  { %v3626_v34 = vcombine.high %v3619_v32, %v3619_v32  ;;  %v2963_v36 = vld [vmem:[%s4325_s1 + $0x4e4] ss:$16 sps:$4 sm:$0xff]   ;;  %v2961_v38 = vld [vmem:[%s4325_s1 + $0x4e0] ss:$16 sps:$4 sm:$0xff]  }
  0x2b   :  { %1451 = vmatpush1.bf16.msra.mxu1 %v2883_v42  ;;  %v2969_v40 = vld [vmem:[%s4325_s1 + $0x504] ss:$16 sps:$4 sm:$0xff]   ;;  %v2967_v42 = vld [vmem:[%s4325_s1 + $0x500] ss:$16 sps:$4 sm:$0xff]  }
  0x2c   :  { %1492 = vmatpush1.bf16.msra.mxu0 %v2884_v43  ;;  %1452 = vmatprep.subr.bf16.mxu1 %v2885_v44  ;;  %v2970_v43 = vld [vmem:[%s4325_s1 + $0x108] ss:$16 sps:$4 sm:$0xff]   ;;  %v2975_v44 = vld [vmem:[%s4325_s1 + $0x524] ss:$16 sps:$4 sm:$0xff]   ;;  %v2973_v46 = vld [vmem:[%s4325_s1 + $0x520] ss:$16 sps:$4 sm:$0xff]  }
  0x2d   :  { %1493 = vmatprep.subr.bf16.mxu0 %v2887_v45  ;;  %v2978_v45 = vld [vmem:[%s4325_s1 + $0x12c] ss:$16 sps:$4 sm:$0xff]   ;;  %v2981_v48 = vld [vmem:[%s4325_s1 + $0x544] ss:$16 sps:$4 sm:$0xff]  }
  0x2f   :  { %1453 = vmatpush1.bf16.msra.mxu1 %v2889_v49  ;;  %v2984_v49 = vld [vmem:[%s4325_s1 + $0x14c] ss:$16 sps:$4 sm:$0xff]  }
  0x30   :  { %1494 = vmatpush1.bf16.msra.mxu0 %v2890_v50  ;;  %1454 = vmatprep.subr.bf16.mxu1 %v2891_v52  ;;  %v2979_v50 = vld [vmem:[%s4325_s1 + $0x540] ss:$16 sps:$4 sm:$0xff]   ;;  %v2982_v52 = vld [vmem:[%s4325_s1 + $0x148] ss:$16 sps:$4 sm:$0xff]  }
  0x31   :  { %1495 = vmatprep.subr.bf16.mxu0 %v2893_v53  ;;  %v2987_v53 = vld [vmem:[%s4325_s1 + $0x564] ss:$16 sps:$4 sm:$0xff]  }
  0x33   :  { %1455 = vmatpush1.bf16.msra.mxu1 %v2895_v54  ;;  %v2990_v54 = vld [vmem:[%s4325_s1 + $0x16c] ss:$16 sps:$4 sm:$0xff]  }
  0x34   :  { %1496 = vmatpush1.bf16.msra.mxu0 %v2896_v55  ;;  %1456 = vmatprep.subr.bf16.mxu1 %v2897_v56  ;;  %v2985_v55 = vld [vmem:[%s4325_s1 + $0x560] ss:$16 sps:$4 sm:$0xff]   ;;  %v2988_v56 = vld [vmem:[%s4325_s1 + $0x168] ss:$16 sps:$4 sm:$0xff]  }
  0x35   :  { %1497 = vmatprep.subr.bf16.mxu0 %v2899_v57  ;;  %v2993_v57 = vld [vmem:[%s4325_s1 + $0x584] ss:$16 sps:$4 sm:$0xff]  }
  0x37   :  { %1457 = vmatpush1.bf16.msra.mxu1 %v2901_v58  ;;  %v2996_v58 = vld [vmem:[%s4325_s1 + $0x18c] ss:$16 sps:$4 sm:$0xff]  }
  0x38   :  { %1498 = vmatpush1.bf16.msra.mxu0 %v2902_v59  ;;  %1458 = vmatprep.subr.bf16.mxu1 %v2903_v60  ;;  %v2991_v59 = vld [vmem:[%s4325_s1 + $0x580] ss:$16 sps:$4 sm:$0xff]   ;;  %v2994_v60 = vld [vmem:[%s4325_s1 + $0x188] ss:$16 sps:$4 sm:$0xff]  }
  0x39   :  { %1499 = vmatprep.subr.bf16.mxu0 %v2905_v61  ;;  %v2999_v61 = vld [vmem:[%s4325_s1 + $0x5a4] ss:$16 sps:$4 sm:$0xff]  }
  0x3b   :  { %1459 = vmatpush1.bf16.msra.mxu1 %v2907_v62  ;;  %v3002_v62 = vld [vmem:[%s4325_s1 + $0x1ac] ss:$16 sps:$4 sm:$0xff]  }
  0x3c   :  { %1500 = vmatpush1.bf16.msra.mxu0 %v2908_v63  ;;  %1460 = vmatprep.subr.bf16.mxu1 %v2909_v0  ;;  %v2997_v63 = vld [vmem:[%s4325_s1 + $0x5a0] ss:$16 sps:$4 sm:$0xff]   ;;  %v3000_v0 = vld [vmem:[%s4325_s1 + $0x1a8] ss:$16 sps:$4 sm:$0xff]  }
  0x3d   :  { %1501 = vmatprep.subr.bf16.mxu0 %v2911_v1  ;;  %v3005_v1 = vld [vmem:[%s4325_s1 + $0x5c4] ss:$16 sps:$4 sm:$0xff]  }
  0x3f   :  { %1461 = vmatpush1.bf16.msra.mxu1 %v2913_v2  ;;  %v3008_v2 = vld [vmem:[%s4325_s1 + $0x1cc] ss:$16 sps:$4 sm:$0xff]  }
  0x40   :  { %1502 = vmatpush1.bf16.msra.mxu0 %v2914_v3  ;;  %1594 = vmatprep.subr.bf16.mxu1 %v2924_v5  ;;  %v3003_v3 = vld [vmem:[%s4325_s1 + $0x5c0] ss:$16 sps:$4 sm:$0xff]   ;;  %v3011_v5 = vld [vmem:[%s4325_s1 + $0x5e4] ss:$16 sps:$4 sm:$0xff]  }
  0x41   :  { %1512 = vmatprep.subr.bf16.mxu0 %v2921_v4  ;;  %v3006_v4 = vld [vmem:[%s4325_s1 + $0x1c8] ss:$16 sps:$4 sm:$0xff]  }
  0x42   :  { %1463 = vmatmul.mubr.bf16.vlgmr.msra.gmra.mrb[0].mxu1 %v3537_v6 }
  0x43   :  { %1504 = vmatmul.mubr.bf16.vlgmr.msra.gmra.mrb[0].mxu0 %v3539_v7  ;;  %1595 = vmatpush1.bf16.msra.mxu1 %v2922_v9  ;;  %v3009_v9 = vld [vmem:[%s4325_s1 + $0x5e0] ss:$16 sps:$4 sm:$0xff]  }
  0x44   :  { %1513 = vmatpush1.bf16.msra.mxu0 %v2919_v8  ;;  %1596 = vmatprep.subr.bf16.mxu1 %v2930_v11  ;;  %v3014_v8 = vld [vmem:[%s4325_s1 + $0x1ec] ss:$16 sps:$4 sm:$0xff]   ;;  %v3019_v11 = vld [vmem:[%s4325_s1 + $0x604] ss:$16 sps:$4 sm:$0xff]  }
  0x45   :  { %1514 = vmatprep.subr.bf16.mxu0 %v2927_v10  ;;  %1626 = vmatprep.mubr.bf16.mxu1 %v3468_v47  ;;  %v2976_v47 = vld [vmem:[%s4325_s1 + $0x128] ss:$16 sps:$4 sm:$0xff]  }
  0x46   :  { %1544 = vmatprep.mubr.bf16.mxu0 %v3626_v34  ;;  %v3012_v10 = vld [vmem:[%s4325_s1 + $0x1e8] ss:$16 sps:$4 sm:$0xff]  }
  0x47   :  { %1597 = vmatpush1.bf16.msra.mxu1 %v2928_v13  ;;  %v3748_v13 = vcombine.low %v3619_v32, %v3619_v32  ;;  %v3052_v32 = vld [vmem:[%s4325_s1 + $0x2ac] ss:$16 sps:$4 sm:$0xff]  }
  0x48   :  { %1515 = vmatpush1.bf16.msra.mxu0 %v2925_v12  ;;  %1598 = vmatprep.subr.bf16.mxu1 %v2936_v15  ;;  %v3022_v12 = vld [vmem:[%s4325_s1 + $0x20c] ss:$16 sps:$4 sm:$0xff]   ;;  %v3020_v15 = vld [vmem:[%s4325_s1 + $0x208] ss:$16 sps:$4 sm:$0xff]  }
  0x49   :  { %1516 = vmatprep.subr.bf16.mxu0 %v2933_v14  ;;  %v3017_v14 = vld [vmem:[%s4325_s1 + $0x600] ss:$16 sps:$4 sm:$0xff]  }
  0x4b   :  { %1599 = vmatpush1.bf16.msra.mxu1 %v2934_v17  ;;  %v3028_v17 = vld [vmem:[%s4325_s1 + $0x22c] ss:$16 sps:$4 sm:$0xff]  }
  0x4c   :  { %1517 = vmatpush1.bf16.msra.mxu0 %v2931_v16  ;;  %1600 = vmatprep.subr.bf16.mxu1 %v2942_v19  ;;  %v3025_v16 = vld [vmem:[%s4325_s1 + $0x624] ss:$16 sps:$4 sm:$0xff]   ;;  %v3026_v19 = vld [vmem:[%s4325_s1 + $0x228] ss:$16 sps:$4 sm:$0xff]  }
  0x4d   :  { %1518 = vmatprep.subr.bf16.mxu0 %v2939_v18  ;;  %v3023_v18 = vld [vmem:[%s4325_s1 + $0x620] ss:$16 sps:$4 sm:$0xff]  }
  0x4f   :  { %1601 = vmatpush1.bf16.msra.mxu1 %v2940_v21  ;;  %v3276_v21 = vmov 0  }
  0x50   :  { %1519 = vmatpush1.bf16.msra.mxu0 %v2937_v20  ;;  %1602 = vmatprep.subr.bf16.mxu1 %v2948_v23  ;;  %v3031_v20 = vld [vmem:[%s4325_s1 + $0x644] ss:$16 sps:$4 sm:$0xff]   ;;  %v3032_v23 = vld [vmem:[%s4325_s1 + $0x248] ss:$16 sps:$4 sm:$0xff]  }
  0x51   :  { %1520 = vmatprep.subr.bf16.mxu0 %v2945_v22  ;;  %v3029_v22 = vld [vmem:[%s4325_s1 + $0x640] ss:$16 sps:$4 sm:$0xff]  }
  0x53   :  { %1603 = vmatpush1.bf16.msra.mxu1 %v2946_v25  ;;  %v3035_v25 = vld [vmem:[%s4325_s1 + $0x660] ss:$16 sps:$4 sm:$0xff]  }
  0x54   :  { %1521 = vmatpush1.bf16.msra.mxu0 %v2943_v24  ;;  %1604 = vmatprep.subr.bf16.mxu1 %v2954_v27  ;;  %v3037_v24 = vld [vmem:[%s4325_s1 + $0x664] ss:$16 sps:$4 sm:$0xff]  }
  0x55   :  { %1522 = vmatprep.subr.bf16.mxu0 %v2951_v26  ;;  %v3038_v26 = vld [vmem:[%s4325_s1 + $0x268] ss:$16 sps:$4 sm:$0xff]   ;;  %v3043_v27 = vld [vmem:[%s4325_s1 + $0x684] ss:$16 sps:$4 sm:$0xff]  }
  0x57   :  { %1605 = vmatpush1.bf16.msra.mxu1 %v2952_v29  ;;  %v3041_v29 = vld [vmem:[%s4325_s1 + $0x680] ss:$16 sps:$4 sm:$0xff]  }
  0x58   :  { %1523 = vmatpush1.bf16.msra.mxu0 %v2949_v28  ;;  %1606 = vmatprep.subr.bf16.mxu1 %v2960_v31  ;;  %v3046_v28 = vld [vmem:[%s4325_s1 + $0x28c] ss:$16 sps:$4 sm:$0xff]   ;;  %v3049_v31 = vld [vmem:[%s4325_s1 + $0x6a4] ss:$16 sps:$4 sm:$0xff]  }
  0x59   :  { %1524 = vmatprep.subr.bf16.mxu0 %v2957_v30  ;;  %v3044_v30 = vld [vmem:[%s4325_s1 + $0x288] ss:$16 sps:$4 sm:$0xff]  }
  0x5b   :  { %1607 = vmatpush1.bf16.msra.mxu1 %v2958_v35  ;;  %v3050_v35 = vld [vmem:[%s4325_s1 + $0x2a8] ss:$16 sps:$4 sm:$0xff]  }
  0x5c   :  { %1525 = vmatpush1.bf16.msra.mxu0 %v2955_v33  ;;  %1608 = vmatprep.subr.bf16.mxu1 %v2966_v37  ;;  %v3047_v33 = vld [vmem:[%s4325_s1 + $0x6a0] ss:$16 sps:$4 sm:$0xff]   ;;  %v3058_v37 = vld [vmem:[%s4325_s1 + $0x2cc] ss:$16 sps:$4 sm:$0xff]  }
  0x5d   :  { %1526 = vmatprep.subr.bf16.mxu0 %v2963_v36  ;;  %v3055_v36 = vld [vmem:[%s4325_s1 + $0x6c4] ss:$16 sps:$4 sm:$0xff]  }
  0x5f   :  { %1609 = vmatpush1.bf16.msra.mxu1 %v2964_v39  ;;  %v3056_v39 = vld [vmem:[%s4325_s1 + $0x2c8] ss:$16 sps:$4 sm:$0xff]  }
  0x60   :  { %1527 = vmatpush1.bf16.msra.mxu0 %v2961_v38  ;;  %1610 = vmatprep.subr.bf16.mxu1 %v2972_v41  ;;  %v3053_v38 = vld [vmem:[%s4325_s1 + $0x6c0] ss:$16 sps:$4 sm:$0xff]   ;;  %v3064_v41 = vld [vmem:[%s4325_s1 + $0x2ec] ss:$16 sps:$4 sm:$0xff]  }
  0x61   :  { %1528 = vmatprep.subr.bf16.mxu0 %v2969_v40  ;;  %v3061_v40 = vld [vmem:[%s4325_s1 + $0x6e4] ss:$16 sps:$4 sm:$0xff]  }
  0x63   :  { %1611 = vmatpush1.bf16.msra.mxu1 %v2970_v43  ;;  %v3062_v43 = vld [vmem:[%s4325_s1 + $0x2e8] ss:$16 sps:$4 sm:$0xff]  }
  0x64   :  { %1529 = vmatpush1.bf16.msra.mxu0 %v2967_v42  ;;  %1612 = vmatprep.subr.bf16.mxu1 %v2978_v45  ;;  %v3059_v42 = vld [vmem:[%s4325_s1 + $0x6e0] ss:$16 sps:$4 sm:$0xff]   ;;  %v3850_v45 = vld [vmem:[%s4326_s0 + $0x18] ss:$0 sps:$4 sm:$0xff]  }
  0x65   :  { %1530 = vmatprep.subr.bf16.mxu0 %v2975_v44  ;;  %v3068_v44 = vld [vmem:[%s4325_s1 + $0x30c] ss:$16 sps:$4 sm:$0xff]  }
  0x67   :  { %1613 = vmatpush1.bf16.msra.mxu1 %v2976_v47  ;;  %v3071_v47 = vld [vmem:[%s4325_s1 + $0x32c] ss:$16 sps:$4 sm:$0xff]  }
  0x68   :  { %1531 = vmatpush1.bf16.msra.mxu0 %v2973_v46  ;;  %1614 = vmatprep.subr.bf16.mxu1 %v2984_v49  ;;  %v3066_v46 = vld [vmem:[%s4325_s1 + $0x308] ss:$16 sps:$4 sm:$0xff]   ;;  %v3074_v49 = vld [vmem:[%s4325_s1 + $0x34c] ss:$16 sps:$4 sm:$0xff]  }
  0x69   :  { %1532 = vmatprep.subr.bf16.mxu0 %v2981_v48  ;;  %v3069_v48 = vld [vmem:[%s4325_s1 + $0x328] ss:$16 sps:$4 sm:$0xff]  }
  0x6b   :  { %1615 = vmatpush1.bf16.msra.mxu1 %v2982_v52  ;;  %v3164_v52 = vld [vmem:[%s4327_s3 + $0x4] ss:$8 sps:$4 sm:$0xff]  }
  0x6c   :  { %1533 = vmatpush1.bf16.msra.mxu0 %v2979_v50  ;;  %1616 = vmatprep.subr.bf16.mxu1 %v2990_v54  ;;  %v3162_v50 = vld [vmem:[%s4327_s3] ss:$8 sps:$4 sm:$0xff]  }
  0x6d   :  { %1534 = vmatprep.subr.bf16.mxu0 %v2987_v53  ;;  %v3167_v53 = vld [vmem:[%s4327_s3 + $0x14] ss:$8 sps:$4 sm:$0xff]   ;;  %v3072_v54 = vld [vmem:[%s4325_s1 + $0x348] ss:$16 sps:$4 sm:$0xff]  }
  0x6f   :  { %1617 = vmatpush1.bf16.msra.mxu1 %v2988_v56  ;;  %v3165_v56 = vld [vmem:[%s4327_s3 + $0x10] ss:$8 sps:$4 sm:$0xff]  }
  0x70   :  { %1535 = vmatpush1.bf16.msra.mxu0 %v2985_v55  ;;  %1618 = vmatprep.subr.bf16.mxu1 %v2996_v58  ;;  %v3077_v55 = vld [vmem:[%s4325_s1 + $0x36c] ss:$16 sps:$4 sm:$0xff]   ;;  %v3075_v58 = vld [vmem:[%s4325_s1 + $0x368] ss:$16 sps:$4 sm:$0xff]  }
  0x71   :  { %1536 = vmatprep.subr.bf16.mxu0 %v2993_v57  ;;  %v3170_v57 = vld [vmem:[%s4327_s3 + $0x24] ss:$8 sps:$4 sm:$0xff]  }
  0x73   :  { %1619 = vmatpush1.bf16.msra.mxu1 %v2994_v60  ;;  %v3168_v60 = vld [vmem:[%s4327_s3 + $0x20] ss:$8 sps:$4 sm:$0xff]  }
  0x74   :  { %1537 = vmatpush1.bf16.msra.mxu0 %v2991_v59  ;;  %1620 = vmatprep.subr.bf16.mxu1 %v3002_v62  ;;  %v3080_v59 = vld [vmem:[%s4325_s1 + $0x38c] ss:$16 sps:$4 sm:$0xff]   ;;  %v3078_v62 = vld [vmem:[%s4325_s1 + $0x388] ss:$16 sps:$4 sm:$0xff]  }
  0x75   :  { %1538 = vmatprep.subr.bf16.mxu0 %v2999_v61  ;;  %v3173_v61 = vld [vmem:[%s4327_s3 + $0x34] ss:$8 sps:$4 sm:$0xff]  }
  0x77   :  { %1621 = vmatpush1.bf16.msra.mxu1 %v3000_v0  ;;  %v3171_v0 = vld [vmem:[%s4327_s3 + $0x30] ss:$8 sps:$4 sm:$0xff]  }
  0x78   :  { %1539 = vmatpush1.bf16.msra.mxu0 %v2997_v63  ;;  %1622 = vmatprep.subr.bf16.mxu1 %v3008_v2  ;;  %v3083_v63 = vld [vmem:[%s4325_s1 + $0x3ac] ss:$16 sps:$4 sm:$0xff]   ;;  %v3081_v2 = vld [vmem:[%s4325_s1 + $0x3a8] ss:$16 sps:$4 sm:$0xff]  }
  0x79   :  { %1540 = vmatprep.subr.bf16.mxu0 %v3005_v1  ;;  %v3176_v1 = vld [vmem:[%s4327_s3 + $0x44] ss:$8 sps:$4 sm:$0xff]  }
  0x7b   :  { %1623 = vmatpush1.bf16.msra.mxu1 %v3006_v4  ;;  %v3174_v4 = vld [vmem:[%s4327_s3 + $0x40] ss:$8 sps:$4 sm:$0xff]  }
  0x7c   :  { %1541 = vmatpush1.bf16.msra.mxu0 %v3003_v3  ;;  %1624 = vmatprep.subr.bf16.mxu1 %v3014_v8  ;;  %v3086_v3 = vld [vmem:[%s4325_s1 + $0x3cc] ss:$16 sps:$4 sm:$0xff]   ;;  %v3084_v8 = vld [vmem:[%s4325_s1 + $0x3c8] ss:$16 sps:$4 sm:$0xff]  }
  0x7d   :  { %1542 = vmatprep.subr.bf16.mxu0 %v3011_v5  ;;  %v3179_v5 = vld [vmem:[%s4327_s3 + $0x54] ss:$8 sps:$4 sm:$0xff]  }
  0x7f   :  { %1625 = vmatpush1.bf16.msra.mxu1 %v3012_v10  ;;  %v3089_v10 = vld [vmem:[%s4325_s1 + $0x3ec] ss:$16 sps:$4 sm:$0xff]  }
  0x80   :  { %1543 = vmatpush1.bf16.msra.mxu0 %v3009_v9  ;;  %1635 = vmatprep.subr.bf16.mxu1 %v3022_v12  ;;  %v3177_v9 = vld [vmem:[%s4327_s3 + $0x50] ss:$8 sps:$4 sm:$0xff]  }
  0x81   :  { %1553 = vmatprep.subr.bf16.mxu0 %v3019_v11  ;;  %v3182_v11 = vld [vmem:[%s4327_s3 + $0x64] ss:$8 sps:$4 sm:$0xff]   ;;  %v3087_v12 = vld [vmem:[%s4325_s1 + $0x3e8] ss:$16 sps:$4 sm:$0xff]  }
  0x82   :  { %1627 = vmatmul.mubr.bf16.vlgmr.msra.gmra.mrb[4].mxu1 %v3537_v6  ;;  %v3034_v6 = vld [vmem:[%s4325_s1 + $0x24c] ss:$16 sps:$4 sm:$0xff]  }
  0x83   :  { %1545 = vmatmul.mubr.bf16.vlgmr.msra.gmra.mrb[0].mxu0 %v3748_v13  ;;  %1636 = vmatpush1.bf16.msra.mxu1 %v3020_v15  ;;  %v3092_v15 = vld [vmem:[%s4325_s1 + $0x40c] ss:$16 sps:$4 sm:$0xff]  }
  0x84   :  { %1554 = vmatpush1.bf16.msra.mxu0 %v3017_v14  ;;  %1637 = vmatprep.subr.bf16.mxu1 %v3028_v17  ;;  %v3180_v14 = vld [vmem:[%s4327_s3 + $0x60] ss:$8 sps:$4 sm:$0xff]  }
  0x85   :  { %1555 = vmatprep.subr.bf16.mxu0 %v3025_v16  ;;  %1585 = vmatprep.mubr.bf16.mxu0 %v3276_v21  ;;  %v3185_v16 = vld [vmem:[%s4327_s3 + $0x74] ss:$8 sps:$4 sm:$0xff]   ;;  %v3090_v17 = vld [vmem:[%s4325_s1 + $0x408] ss:$16 sps:$4 sm:$0xff]  }
  0x86   :  { %1667 = vmatprep.mubr.bf16.mxu1 %v3479_v51  ;;  %v3040_v51 = vld [vmem:[%s4325_s1 + $0x26c] ss:$16 sps:$4 sm:$0xff]  }
  0x87   :  { %1638 = vmatpush1.bf16.msra.mxu1 %v3026_v19  ;;  %v3183_v19 = vld [vmem:[%s4327_s3 + $0x70] ss:$8 sps:$4 sm:$0xff]  }
  0x88   :  { %1556 = vmatpush1.bf16.msra.mxu0 %v3023_v18  ;;  %1639 = vmatprep.subr.bf16.mxu1 %v3034_v6  ;;  %v3095_v18 = vld [vmem:[%s4325_s1 + $0x42c] ss:$16 sps:$4 sm:$0xff]   ;;  %v3093_v6 = vld [vmem:[%s4325_s1 + $0x428] ss:$16 sps:$4 sm:$0xff]  }
  0x89   :  { %1557 = vmatprep.subr.bf16.mxu0 %v3031_v20  ;;  %v3188_v20 = vld [vmem:[%s4327_s3 + $0x84] ss:$8 sps:$4 sm:$0xff]  }
  0x8b   :  { %1640 = vmatpush1.bf16.msra.mxu1 %v3032_v23  ;;  %v3186_v23 = vld [vmem:[%s4327_s3 + $0x80] ss:$8 sps:$4 sm:$0xff]  }
  0x8c   :  { %1558 = vmatpush1.bf16.msra.mxu0 %v3029_v22  ;;  %1641 = vmatprep.subr.bf16.mxu1 %v3040_v51  ;;  %v3098_v22 = vld [vmem:[%s4325_s1 + $0x44c] ss:$16 sps:$4 sm:$0xff]   ;;  %v3189_v51 = vld [vmem:[%s4327_s3 + $0x90] ss:$8 sps:$4 sm:$0xff]  }
  0x8d   :  { %1559 = vmatprep.subr.bf16.mxu0 %v3037_v24  ;;  %v3101_v24 = vld [vmem:[%s4325_s1 + $0x46c] ss:$16 sps:$4 sm:$0xff]  }
  0x8f   :  { %1642 = vmatpush1.bf16.msra.mxu1 %v3038_v26  ;;  %v3099_v26 = vld [vmem:[%s4325_s1 + $0x468] ss:$16 sps:$4 sm:$0xff]  }
  0x90   :  { %1560 = vmatpush1.bf16.msra.mxu0 %v3035_v25  ;;  %1643 = vmatprep.subr.bf16.mxu1 %v3046_v28  ;;  %v3194_v25 = vld [vmem:[%s4327_s3 + $0xa4] ss:$8 sps:$4 sm:$0xff]   ;;  %v3192_v28 = vld [vmem:[%s4327_s3 + $0xa0] ss:$8 sps:$4 sm:$0xff]  }
  0x91   :  { %1561 = vmatprep.subr.bf16.mxu0 %v3043_v27  ;;  %v3104_v27 = vld [vmem:[%s4325_s1 + $0x48c] ss:$16 sps:$4 sm:$0xff]  }
  0x93   :  { %1644 = vmatpush1.bf16.msra.mxu1 %v3044_v30  ;;  %v3102_v30 = vld [vmem:[%s4325_s1 + $0x488] ss:$16 sps:$4 sm:$0xff]  }
  0x94   :  { %1562 = vmatpush1.bf16.msra.mxu0 %v3041_v29  ;;  %1645 = vmatprep.subr.bf16.mxu1 %v3052_v32  ;;  %v3197_v29 = vld [vmem:[%s4327_s3 + $0xb4] ss:$8 sps:$4 sm:$0xff]   ;;  %v3195_v32 = vld [vmem:[%s4327_s3 + $0xb0] ss:$8 sps:$4 sm:$0xff]  }
  0x95   :  { %1563 = vmatprep.subr.bf16.mxu0 %v3049_v31  ;;  %v3107_v31 = vld [vmem:[%s4325_s1 + $0x4ac] ss:$16 sps:$4 sm:$0xff]  }
  0x97   :  { %1646 = vmatpush1.bf16.msra.mxu1 %v3050_v35  ;;  %v3105_v35 = vld [vmem:[%s4325_s1 + $0x4a8] ss:$16 sps:$4 sm:$0xff]  }
  0x98   :  { %1564 = vmatpush1.bf16.msra.mxu0 %v3047_v33  ;;  %1647 = vmatprep.subr.bf16.mxu1 %v3058_v37  ;;  %v3200_v33 = vld [vmem:[%s4327_s3 + $0xc4] ss:$8 sps:$4 sm:$0xff]   ;;  %v3198_v37 = vld [vmem:[%s4327_s3 + $0xc0] ss:$8 sps:$4 sm:$0xff]  }
  0x99   :  { %1565 = vmatprep.subr.bf16.mxu0 %v3055_v36  ;;  %v3110_v36 = vld [vmem:[%s4325_s1 + $0x4cc] ss:$16 sps:$4 sm:$0xff]  }
  0x9b   :  { %1648 = vmatpush1.bf16.msra.mxu1 %v3056_v39  ;;  %v3108_v39 = vld [vmem:[%s4325_s1 + $0x4c8] ss:$16 sps:$4 sm:$0xff]  }
  0x9c   :  { %1566 = vmatpush1.bf16.msra.mxu0 %v3053_v38  ;;  %1649 = vmatprep.subr.bf16.mxu1 %v3064_v41  ;;  %v3203_v38 = vld [vmem:[%s4327_s3 + $0xd4] ss:$8 sps:$4 sm:$0xff]   ;;  %v3201_v41 = vld [vmem:[%s4327_s3 + $0xd0] ss:$8 sps:$4 sm:$0xff]  }
  0x9d   :  { %1567 = vmatprep.subr.bf16.mxu0 %v3061_v40  ;;  %v3113_v40 = vld [vmem:[%s4325_s1 + $0x4ec] ss:$16 sps:$4 sm:$0xff]  }
  0x9f   :  { %1650 = vmatpush1.bf16.msra.mxu1 %v3062_v43  ;;  %v3116_v43 = vld [vmem:[%s4325_s1 + $0x50c] ss:$16 sps:$4 sm:$0xff]  }
  0xa0   :  { %1568 = vmatpush1.bf16.msra.mxu0 %v3059_v42  ;;  %1651 = vmatprep.subr.bf16.mxu1 %v3068_v44  ;;  %v3111_v42 = vld [vmem:[%s4325_s1 + $0x4e8] ss:$16 sps:$4 sm:$0xff]  }
  0xa1   :  { %2162 = vmatprep.subr.bf16.mxu0 %v3164_v52  ;;  %v3114_v44 = vld [vmem:[%s4325_s1 + $0x508] ss:$16 sps:$4 sm:$0xff]  }
  0xa2   :  { %v3123_v52 = vld [vmem:[%s4325_s1 + $0x568] ss:$16 sps:$4 sm:$0xff]  }
  0xa3   :  { %1586 = vmatmul.mubr.bf16.vlgmr.msra.gmra.mrb[0].mxu0 %v3850_v45  ;;  %1652 = vmatpush1.bf16.msra.mxu1 %v3066_v46  ;;  %v3119_v46 = vld [vmem:[%s4325_s1 + $0x52c] ss:$16 sps:$4 sm:$0xff]  }
  0xa4   :  { %1653 = vmatprep.subr.bf16.mxu1 %v3071_v47  ;;  %2163 = vmatpush1.bf16.msra.mxu0 %v3162_v50  ;;  %v3117_v47 = vld [vmem:[%s4325_s1 + $0x528] ss:$16 sps:$4 sm:$0xff]   ;;  %v3125_v50 = vld [vmem:[%s4325_s1 + $0x56c] ss:$16 sps:$4 sm:$0xff]  }
  0xa5   :  { %2164 = vmatprep.subr.bf16.mxu0 %v3167_v53  ;;  %v3128_v53 = vld [vmem:[%s4325_s1 + $0x58c] ss:$16 sps:$4 sm:$0xff]  }
  0xa7   :  { %1654 = vmatpush1.bf16.msra.mxu1 %v3069_v48  ;;  %v3122_v48 = vld [vmem:[%s4325_s1 + $0x54c] ss:$16 sps:$4 sm:$0xff]  }
  0xa8   :  { %1655 = vmatprep.subr.bf16.mxu1 %v3074_v49  ;;  %2165 = vmatpush1.bf16.msra.mxu0 %v3165_v56  ;;  %v3120_v49 = vld [vmem:[%s4325_s1 + $0x548] ss:$16 sps:$4 sm:$0xff]  }
  0xa9   :  { %2166 = vmatprep.subr.bf16.mxu0 %v3170_v57  ;;  %v3129_v56 = vld [vmem:[%s4325_s1 + $0x5a8] ss:$16 sps:$4 sm:$0xff]   ;;  %v3134_v57 = vld [vmem:[%s4325_s1 + $0x5cc] ss:$16 sps:$4 sm:$0xff]  }
  0xab   :  { %1656 = vmatpush1.bf16.msra.mxu1 %v3072_v54  ;;  %v3126_v54 = vld [vmem:[%s4325_s1 + $0x588] ss:$16 sps:$4 sm:$0xff]  }
  0xac   :  { %1657 = vmatprep.subr.bf16.mxu1 %v3077_v55  ;;  %2167 = vmatpush1.bf16.msra.mxu0 %v3168_v60  ;;  %v3131_v55 = vld [vmem:[%s4325_s1 + $0x5ac] ss:$16 sps:$4 sm:$0xff]   ;;  %v3132_v60 = vld [vmem:[%s4325_s1 + $0x5c8] ss:$16 sps:$4 sm:$0xff]  }
  0xad   :  { %2168 = vmatprep.subr.bf16.mxu0 %v3173_v61  ;;  %v3137_v61 = vld [vmem:[%s4325_s1 + $0x5ec] ss:$16 sps:$4 sm:$0xff]  }
  0xaf   :  { %1658 = vmatpush1.bf16.msra.mxu1 %v3075_v58  ;;  %v3206_v58 = vld [vmem:[%s4327_s3 + $0xe4] ss:$8 sps:$4 sm:$0xff]  }
  0xb0   :  { %1659 = vmatprep.subr.bf16.mxu1 %v3080_v59  ;;  %2169 = vmatpush1.bf16.msra.mxu0 %v3171_v0  ;;  %v3204_v59 = vld [vmem:[%s4327_s3 + $0xe0] ss:$8 sps:$4 sm:$0xff]  }
  0xb1   :  { %2170 = vmatprep.subr.bf16.mxu0 %v3176_v1  ;;  %v3135_v0 = vld [vmem:[%s4325_s1 + $0x5e8] ss:$16 sps:$4 sm:$0xff]   ;;  %v3140_v1 = vld [vmem:[%s4325_s1 + $0x60c] ss:$16 sps:$4 sm:$0xff]  }
  0xb3   :  { %1660 = vmatpush1.bf16.msra.mxu1 %v3078_v62  ;;  %v3209_v62 = vld [vmem:[%s4327_s3 + $0xf4] ss:$8 sps:$4 sm:$0xff]  }
  0xb4   :  { %1661 = vmatprep.subr.bf16.mxu1 %v3083_v63  ;;  %2171 = vmatpush1.bf16.msra.mxu0 %v3174_v4  ;;  %v3207_v63 = vld [vmem:[%s4327_s3 + $0xf0] ss:$8 sps:$4 sm:$0xff]   ;;  %v3143_v4 = vld [vmem:[%s4325_s1 + $0x62c] ss:$16 sps:$4 sm:$0xff]  }
  0xb5   :  { %2172 = vmatprep.subr.bf16.mxu0 %v3179_v5  ;;  %v3141_v5 = vld [vmem:[%s4325_s1 + $0x628] ss:$16 sps:$4 sm:$0xff]  }
  0xb7   :  { %1662 = vmatpush1.bf16.msra.mxu1 %v3081_v2  ;;  %v3212_v2 = vld [vmem:[%s4327_s3 + $0x104] ss:$8 sps:$4 sm:$0xff]  }
  0xb8   :  { %1663 = vmatprep.subr.bf16.mxu1 %v3086_v3  ;;  %2173 = vmatpush1.bf16.msra.mxu0 %v3177_v9  ;;  %v3138_v3 = vld [vmem:[%s4325_s1 + $0x608] ss:$16 sps:$4 sm:$0xff]  }
  0xb9   :  { %2174 = vmatprep.subr.bf16.mxu0 %v3182_v11  ;;  %v3144_v9 = vld [vmem:[%s4325_s1 + $0x648] ss:$16 sps:$4 sm:$0xff]  }
  0xba   :  { %v3150_v11 = vld [vmem:[%s4325_s1 + $0x688] ss:$16 sps:$4 sm:$0xff]  }
  0xbb   :  { %1664 = vmatpush1.bf16.msra.mxu1 %v3084_v8  ;;  %v3146_v8 = vld [vmem:[%s4325_s1 + $0x64c] ss:$16 sps:$4 sm:$0xff]  }
  0xbc   :  { %1665 = vmatprep.subr.bf16.mxu1 %v3089_v10  ;;  %2175 = vmatpush1.bf16.msra.mxu0 %v3180_v14  ;;  %v3152_v10 = vld [vmem:[%s4325_s1 + $0x68c] ss:$16 sps:$4 sm:$0xff]   ;;  %v3153_v14 = vld [vmem:[%s4325_s1 + $0x6a8] ss:$16 sps:$4 sm:$0xff]  }
  0xbd   :  { %2176 = vmatprep.subr.bf16.mxu0 %v3185_v16 }
  0xbf   :  { %1666 = vmatpush1.bf16.msra.mxu1 %v3087_v12  ;;  %v3155_v12 = vld [vmem:[%s4325_s1 + $0x6ac] ss:$16 sps:$4 sm:$0xff]  }
  0xc0   :  { %1676 = vmatprep.subr.bf16.mxu1 %v3092_v15  ;;  %2177 = vmatpush1.bf16.msra.mxu0 %v3183_v19  ;;  %v3158_v15 = vld [vmem:[%s4325_s1 + $0x6cc] ss:$16 sps:$4 sm:$0xff]   ;;  %v3156_v19 = vld [vmem:[%s4325_s1 + $0x6c8] ss:$16 sps:$4 sm:$0xff]  }
  0xc1   :  { %2178 = vmatprep.subr.bf16.mxu0 %v3188_v20 }
  0xc2   :  { %1668 = vmatmul.mubr.bf16.vlgmr.msra.gmra.mrb[4].mxu1 %v3539_v7  ;;  %v3191_v7 = vld [vmem:[%s4327_s3 + $0x94] ss:$8 sps:$4 sm:$0xff]  }
  0xc3   :  { %1677 = vmatpush1.bf16.msra.mxu1 %v3090_v17  ;;  %1708 = vmatprep.mubr.bf16.mxu1 %v3626_v34  ;;  %v3096_v34 = vld [vmem:[%s4325_s1 + $0x448] ss:$16 sps:$4 sm:$0xff]  }
  0xc4   :  { %1678 = vmatprep.subr.bf16.mxu1 %v3095_v18  ;;  %2179 = vmatpush1.bf16.msra.mxu0 %v3186_v23  ;;  %v265_v23 = vlaneseq }
  0xc5   :  { %2180 = vmatprep.subr.bf16.mxu0 %v3191_v7 }
  0xc6   :  { %v4146_v7 = vshrl.u32 %v265_v23, 7 }
  0xc7   :  { %1679 = vmatpush1.bf16.msra.mxu1 %v3093_v6  ;;  %v3161_v6 = vld [vmem:[%s4325_s1 + $0x6ec] ss:$16 sps:$4 sm:$0xff]  }
  0xc8   :  { %1680 = vmatprep.subr.bf16.mxu1 %v3098_v22  ;;  %2181 = vmatpush1.bf16.msra.mxu0 %v3189_v51  ;;  %v3159_v22 = vld [vmem:[%s4325_s1 + $0x6e8] ss:$16 sps:$4 sm:$0xff]   ;;  %v271_v51 = vsub.s32 1, %v4146_v7 }
  0xc9   :  { %2182 = vmatprep.subr.bf16.mxu0 %v3194_v25 }
  0xcb   :  { %1681 = vmatpush1.bf16.msra.mxu1 %v3096_v34  ;;  %v267_v34 = vsub.s32 0, %v4146_v7 }
  0xcc   :  { %1682 = vmatprep.subr.bf16.mxu1 %v3101_v24  ;;  %2183 = vmatpush1.bf16.msra.mxu0 %v3192_v28  ;;  %v4152_v24 = vld [vmem:[%s4328_s2] sm:$0xf] }
  0xcd   :  { %2184 = vmatprep.subr.bf16.mxu0 %v3197_v29  ;;  %v268_v25 = vrot.slane %v4152_v24, %v267_v34 }
  0xcf   :  { %1683 = vmatpush1.bf16.msra.mxu1 %v3099_v26 }
  0xd0   :  { %1684 = vmatprep.subr.bf16.mxu1 %v3104_v27  ;;  %2185 = vmatpush1.bf16.msra.mxu0 %v3195_v32 }
  0xd1   :  { %2186 = vmatprep.subr.bf16.mxu0 %v3200_v33 }
  0xd3   :  { %1685 = vmatpush1.bf16.msra.mxu1 %v3102_v30 }
  0xd4   :  { %1686 = vmatprep.subr.bf16.mxu1 %v3107_v31  ;;  %2187 = vmatpush1.bf16.msra.mxu0 %v3198_v37 }
  0xd5   :  { %2188 = vmatprep.subr.bf16.mxu0 %v3203_v38  ;;  %v3210_v38 = vld [vmem:[%s4327_s3 + $0x100] ss:$8 sps:$4 sm:$0xff]  }
  0xd7   :  { %1687 = vmatpush1.bf16.msra.mxu1 %v3105_v35 }
  0xd8   :  { %1688 = vmatprep.subr.bf16.mxu1 %v3110_v36  ;;  %2189 = vmatpush1.bf16.msra.mxu0 %v3201_v41  ;;  %v3213_v41 = vld [vmem:[%s4327_s3 + $0x110] ss:$8 sps:$4 sm:$0xff]  }
  0xd9   :  { %2190 = vmatprep.subr.bf16.mxu0 %v3206_v58  ;;  %v3265_v58 = vld [vmem:[%s4329_s5 + $0x18] sm:$0xff]  }
  0xdb   :  { %1689 = vmatpush1.bf16.msra.mxu1 %v3108_v39 }
  0xdc   :  { %1690 = vmatprep.subr.bf16.mxu1 %v3113_v40  ;;  %2191 = vmatpush1.bf16.msra.mxu0 %v3204_v59  ;;  %v3215_v40 = vld [vmem:[%s4327_s3 + $0x114] ss:$8 sps:$4 sm:$0xff]   ;;  %v3266_v59 = vld [vmem:[%s4329_s5 + $0x60] sm:$0xff]  }
  0xdd   :  { %2192 = vmatprep.subr.bf16.mxu0 %v3209_v62  ;;  %v3268_v62 = vld [vmem:[%s4329_s5 + $0x68] sm:$0xff]  }
  0xdf   :  { %1691 = vmatpush1.bf16.msra.mxu1 %v3111_v42  ;;  %v3218_v42 = vld [vmem:[%s4327_s3 + $0x124] ss:$8 sps:$4 sm:$0xff]  }
  0xe0   :  { %1692 = vmatprep.subr.bf16.mxu1 %v3116_v43  ;;  %2193 = vmatpush1.bf16.msra.mxu0 %v3207_v63  ;;  %v3258_v43 = vld [vmem:[%s4329_s5 + $0x40] sm:$0xff]  }
  0xe1   :  { %2203 = vmatprep.subr.bf16.mxu0 %v3212_v2  ;;  %v3230_v63 = vld [vmem:[%s4327_s3 + $0x164] ss:$8 sps:$4 sm:$0xff]   ;;  %v3233_v2 = vld [vmem:[%s4327_s3 + $0x174] ss:$8 sps:$4 sm:$0xff]  }
  0xe3   :  { %1693 = vmatpush1.bf16.msra.mxu1 %v3114_v44  ;;  %v3259_v44 = vld [vmem:[%s4329_s5] sm:$0xff]  }
  0xe4   :  { %1694 = vmatprep.subr.bf16.mxu1 %v3119_v46  ;;  %v3216_v46 = vld [vmem:[%s4327_s3 + $0x120] ss:$8 sps:$4 sm:$0xff]  }
  0xe7   :  { %1695 = vmatpush1.bf16.msra.mxu1 %v3117_v47  ;;  %v3260_v47 = vld [vmem:[%s4329_s5 + $0x48] sm:$0xff]  }
  0xe8   :  { %1696 = vmatprep.subr.bf16.mxu1 %v3122_v48  ;;  %v3261_v48 = vld [vmem:[%s4329_s5 + $0x8] sm:$0xff]  }
  0xeb   :  { %1697 = vmatpush1.bf16.msra.mxu1 %v3120_v49  ;;  %v3262_v49 = vld [vmem:[%s4329_s5 + $0x50] sm:$0xff]  }
  0xec   :  { %1698 = vmatprep.subr.bf16.mxu1 %v3125_v50  ;;  %v3221_v50 = vld [vmem:[%s4327_s3 + $0x134] ss:$8 sps:$4 sm:$0xff]  }
  0xef   :  { %1699 = vmatpush1.bf16.msra.mxu1 %v3123_v52  ;;  %v3219_v52 = vld [vmem:[%s4327_s3 + $0x130] ss:$8 sps:$4 sm:$0xff]  }
  0xf0   :  { %1700 = vmatprep.subr.bf16.mxu1 %v3128_v53  ;;  %v3263_v53 = vld [vmem:[%s4329_s5 + $0x10] sm:$0xff]  }
  0xf3   :  { %1701 = vmatpush1.bf16.msra.mxu1 %v3126_v54  ;;  %v3264_v54 = vld [vmem:[%s4329_s5 + $0x58] sm:$0xff]  }
  0xf4   :  { %1702 = vmatprep.subr.bf16.mxu1 %v3131_v55  ;;  %v3224_v55 = vld [vmem:[%s4327_s3 + $0x144] ss:$8 sps:$4 sm:$0xff]  }
  0xf7   :  { %1703 = vmatpush1.bf16.msra.mxu1 %v3129_v56  ;;  %v3222_v56 = vld [vmem:[%s4327_s3 + $0x140] ss:$8 sps:$4 sm:$0xff]  }
  0xf8   :  { %1704 = vmatprep.subr.bf16.mxu1 %v3134_v57  ;;  %v3227_v57 = vld [vmem:[%s4327_s3 + $0x154] ss:$8 sps:$4 sm:$0xff]  }
  0xfb   :  { %1705 = vmatpush1.bf16.msra.mxu1 %v3132_v60  ;;  %v3267_v60 = vld [vmem:[%s4329_s5 + $0x20] sm:$0xff]  }
  0xfc   :  { %1706 = vmatprep.subr.bf16.mxu1 %v3137_v61  ;;  %v3225_v61 = vld [vmem:[%s4327_s3 + $0x150] ss:$8 sps:$4 sm:$0xff]  }
  0xff   :  { %1707 = vmatpush1.bf16.msra.mxu1 %v3135_v0  ;;  %v3269_v0 = vld [vmem:[%s4329_s5 + $0x28] sm:$0xff]  }
 0x100   :  { %1717 = vmatprep.subr.bf16.mxu1 %v3140_v1  ;;  %v3228_v1 = vld [vmem:[%s4327_s3 + $0x160] ss:$8 sps:$4 sm:$0xff]  }
 0x102   :  { %1709 = vmatmul.mubr.bf16.vlgmr.msra.gmra.mrb[4].mxu1 %v3748_v13  ;;  %v3149_v13 = vld [vmem:[%s4325_s1 + $0x66c] ss:$16 sps:$4 sm:$0xff]  }
 0x103   :  { %1718 = vmatpush1.bf16.msra.mxu1 %v3138_v3  ;;  %1749 = vmatprep.mubr.bf16.mxu1 %v3276_v21  ;;  %v3147_v21 = vld [vmem:[%s4325_s1 + $0x668] ss:$16 sps:$4 sm:$0xff]  }
 0x104   :  { %1719 = vmatprep.subr.bf16.mxu1 %v3143_v4  ;;  %v3231_v3 = vld [vmem:[%s4327_s3 + $0x170] ss:$8 sps:$4 sm:$0xff]   ;;  %v3236_v4 = vld [vmem:[%s4327_s3 + $0x184] ss:$8 sps:$4 sm:$0xff]  }
 0x107   :  { %1720 = vmatpush1.bf16.msra.mxu1 %v3141_v5  ;;  %v3234_v5 = vld [vmem:[%s4327_s3 + $0x180] ss:$8 sps:$4 sm:$0xff]  }
 0x108   :  { %1721 = vmatprep.subr.bf16.mxu1 %v3146_v8  ;;  %v3239_v8 = vld [vmem:[%s4327_s3 + $0x194] ss:$8 sps:$4 sm:$0xff]  }
 0x10b   :  { %1722 = vmatpush1.bf16.msra.mxu1 %v3144_v9  ;;  %v3237_v9 = vld [vmem:[%s4327_s3 + $0x190] ss:$8 sps:$4 sm:$0xff]  }
 0x10c   :  { %1723 = vmatprep.subr.bf16.mxu1 %v3149_v13  ;;  %v3242_v13 = vld [vmem:[%s4327_s3 + $0x1a4] ss:$8 sps:$4 sm:$0xff]  }
 0x10f   :  { %1724 = vmatpush1.bf16.msra.mxu1 %v3147_v21  ;;  %v3240_v21 = vld [vmem:[%s4327_s3 + $0x1a0] ss:$8 sps:$4 sm:$0xff]  }
 0x110   :  { %1725 = vmatprep.subr.bf16.mxu1 %v3152_v10  ;;  %v3245_v10 = vld [vmem:[%s4327_s3 + $0x1b4] ss:$8 sps:$4 sm:$0xff]  }
 0x113   :  { %1726 = vmatpush1.bf16.msra.mxu1 %v3150_v11  ;;  %v3243_v11 = vld [vmem:[%s4327_s3 + $0x1b0] ss:$8 sps:$4 sm:$0xff]  }
 0x114   :  { %1727 = vmatprep.subr.bf16.mxu1 %v3155_v12  ;;  %v3248_v12 = vld [vmem:[%s4327_s3 + $0x1c4] ss:$8 sps:$4 sm:$0xff]  }
 0x115   :  { %v1464_v16 = vpop.f32.mrb[0].mxu1 }
 0x116   :  { %v1466_v17 = vpop.f32.mrb[1].mxu1  ;;  %v1465_v26 = vadd.f32 %v1464_v16, %v268_v25  ;;  %v3249_v16 = vld [vmem:[%s4327_s3 + $0x1d0] ss:$8 sps:$4 sm:$0xff]  }
 0x117   :  { %v1468_v18 = vpop.f32.mrb[2].mxu1  ;;  %1728 = vmatpush1.bf16.msra.mxu1 %v3153_v14  ;;  %v3246_v14 = vld [vmem:[%s4327_s3 + $0x1c0] ss:$8 sps:$4 sm:$0xff]  }
 0x118   :  { %v1469_v20 = vpop.f32.mrb[3].mxu1  ;;  %1729 = vmatprep.subr.bf16.mxu1 %v3158_v15  ;;  %v3251_v15 = vld [vmem:[%s4327_s3 + $0x1d4] ss:$8 sps:$4 sm:$0xff]   ;;  %v3252_v18 = vld [vmem:[%s4327_s3 + $0x1e0] ss:$8 sps:$4 sm:$0xff]  }
 0x119   :  { %v3255_v20 = vld [vmem:[%s4327_s3 + $0x1f0] ss:$8 sps:$4 sm:$0xff]  }
 0x11b   :  { %1730 = vmatpush1.bf16.msra.mxu1 %v3156_v19  ;;  %v3257_v19 = vld [vmem:[%s4327_s3 + $0x1f4] ss:$8 sps:$4 sm:$0xff]  }
 0x11c   :  { %1731 = vmatprep.subr.bf16.mxu1 %v3161_v6  ;;  %v275_v6 = vsub.s32 2, %v4146_v7 }
 0x11e   :  { %v276_v23 = vrot.slane %v4152_v24, %v275_v6 }
 0x11f   :  { %1732 = vmatpush1.bf16.msra.mxu1 %v3159_v22  ;;  %v279_v22 = vsub.s32 3, %v4146_v7 }
 0x120   :  { %2764 = vmatprep.subr.bf16.mxu1 %v3258_v43 }
 0x121   :  { %v280_v25 = vrot.slane %v4152_v24, %v279_v22 }
 0x122   :  { %1750 = vmatmul.mubr.bf16.vlgmr.msra.gmra.mrb[4].mxu1 %v3850_v45  ;;  %v272_v45 = vrot.slane %v4152_v24, %v271_v51  ;;  %v3271_v24 = vld [vmem:[%s4329_s5 + $0x30] sm:$0xff]  }
 0x123   :  { %2765 = vmatpush3.bf16.msra.mxu1 %v3259_v44 }
 0x124   :  { %v1467_v27 = vadd.f32 %v1466_v17, %v272_v45  ;;  %2766 = vmatprep.subr.bf16.mxu1 %v3260_v47  ;;  %v3254_v17 = vld [vmem:[%s4327_s3 + $0x1e4] ss:$8 sps:$4 sm:$0xff]  }
 0x127   :  { %2767 = vmatpush3.bf16.msra.mxu1 %v3261_v48 }
 0x128   :  { %2768 = vmatprep.subr.bf16.mxu1 %v3262_v49 }
 0x12b   :  { %2769 = vmatpush3.bf16.msra.mxu1 %v3263_v53 }
 0x12c   :  { %2770 = vmatprep.subr.bf16.mxu1 %v3264_v54  ;;  %v14_v54 = vstv %s4331_s8 }
 0x12d   :  { %15 = vst [vmem:[#allocation2] sm:$0x1] %v14_v54 }
 0x12f   :  { %2771 = vmatpush3.bf16.msra.mxu1 %v3265_v58 }
 0x130   :  { %2772 = vmatprep.subr.bf16.mxu1 %v3266_v59  ;;  %v2762_v59 = vld [vmem:[%s4333_s7] ss:$0 sm:$0xff] }
 0x133   :  { %2773 = vmatpush3.bf16.msra.mxu1 %v3267_v60 }
 0x134   :  { %2774 = vmatprep.subr.bf16.mxu1 %v3268_v62  ;;  %v2763_v62 = vld [vmem:[#allocation2] ss:$0 sm:$0xff] }
 0x137   :  { %2775 = vmatpush3.bf16.msra.mxu1 %v3269_v0 }
 0x176   :  { %v1587_v28 = vpop.f32.mrb[0].mxu0 }
 0x177   :  { %v2787_v29 = vadd.f32 %v1587_v28, %v1465_v26  ;;  %v1589_v30 = vpop.f32.mrb[1].mxu0 }
 0x178   :  { %v2789_v31 = vadd.f32 %v1589_v30, %v1467_v27  ;;  %v1591_v32 = vpop.f32.mrb[2].mxu0 }
 0x179   :  { %v1758_v33 = vmax.f32 %v2787_v29, 0.0  ;;  %v1592_v35 = vpop.f32.mrb[3].mxu0 }
 0x17a   :  { %v1759_v36 = vmax.f32 %v2789_v31, 0.0 }
 0x17b   :  { %v1762_v39 = vpack.c.bf16 %v1758_v33, %v1758_v33 }
 0x17c   :  { %v1763_v37 = vpack.c.bf16 %v1759_v36, %v1759_v36  ;;  %v3270_v36 = vld [vmem:[%s4329_s5 + $0x70] sm:$0xff]  }
 0x17d   :  { %2776 = vmatprep.subr.bf16.mxu1 %v3270_v36 }
 0x17e   :  { %2194 = vmatprep.mubr.bf16.mxu0 %v1763_v37  ;;  %2777 = vmatpush3.bf16.msra.mxu1 %v3271_v24  ;;  %v3272_v37 = vld [vmem:[%s4329_s5 + $0x78] sm:$0xff]  }
 0x17f   :  { %2195 = vmatmul.mubr.bf16.vlgmr.msra.gmra.mrb[4].mxu0 %v1762_v39  ;;  %2778 = vmatprep.subr.bf16.mxu1 %v3272_v37  ;;  %v1830_v39 = vld [vmem:[%s4330_s4] sm:$0x3] }
 0x180   :  { %2204 = vmatpush1.bf16.msra.mxu0 %v3210_v38  ;;  %v3273_v38 = vld [vmem:[%s4329_s5 + $0x38] sm:$0xff]  }
 0x181   :  { %2205 = vmatprep.subr.bf16.mxu0 %v3215_v40  ;;  %v1835_v40 = vrot.slane %v1830_v39, %v267_v34 }
 0x182   :  { %2779 = vmatpush3.bf16.msra.mxu1 %v3273_v38 }
 0x184   :  { %2206 = vmatpush1.bf16.msra.mxu0 %v3213_v41  ;;  %v1839_v41 = vrot.slane %v1830_v39, %v271_v51  ;;  %v2745_v51 = vld [vmem:[%s4332_s6] ss:$0 sm:$0xff] }
 0x185   :  { %2207 = vmatprep.subr.bf16.mxu0 %v3218_v42 }
 0x188   :  { %2208 = vmatpush1.bf16.msra.mxu0 %v3216_v46 }
 0x189   :  { %2209 = vmatprep.subr.bf16.mxu0 %v3221_v50 }
 0x18c   :  { %2210 = vmatpush1.bf16.msra.mxu0 %v3219_v52 }
 0x18d   :  { %2211 = vmatprep.subr.bf16.mxu0 %v3224_v55 }
 0x190   :  { %2212 = vmatpush1.bf16.msra.mxu0 %v3222_v56 }
 0x191   :  { %2213 = vmatprep.subr.bf16.mxu0 %v3227_v57 }
 0x194   :  { %2214 = vmatpush1.bf16.msra.mxu0 %v3225_v61 }
 0x195   :  { %2215 = vmatprep.subr.bf16.mxu0 %v3230_v63 }
 0x198   :  { %2216 = vmatpush1.bf16.msra.mxu0 %v3228_v1 }
 0x199   :  { %2217 = vmatprep.subr.bf16.mxu0 %v3233_v2 }
 0x19c   :  { %2218 = vmatpush1.bf16.msra.mxu0 %v3231_v3 }
 0x19d   :  { %2219 = vmatprep.subr.bf16.mxu0 %v3236_v4 }
 0x1a0   :  { %2220 = vmatpush1.bf16.msra.mxu0 %v3234_v5 }
 0x1a1   :  { %2221 = vmatprep.subr.bf16.mxu0 %v3239_v8 }
 0x1a4   :  { %2222 = vmatpush1.bf16.msra.mxu0 %v3237_v9 }
 0x1a5   :  { %2223 = vmatprep.subr.bf16.mxu0 %v3242_v13 }
 0x1a8   :  { %2224 = vmatpush1.bf16.msra.mxu0 %v3240_v21 }
 0x1a9   :  { %2225 = vmatprep.subr.bf16.mxu0 %v3245_v10 }
 0x1ac   :  { %2226 = vmatpush1.bf16.msra.mxu0 %v3243_v11 }
 0x1ad   :  { %2227 = vmatprep.subr.bf16.mxu0 %v3248_v12 }
 0x1b0   :  { %2228 = vmatpush1.bf16.msra.mxu0 %v3246_v14 }
 0x1b1   :  { %2229 = vmatprep.subr.bf16.mxu0 %v3251_v15 }
 0x1b4   :  { %2230 = vmatpush1.bf16.msra.mxu0 %v3249_v16 }
 0x1b5   :  { %2231 = vmatprep.subr.bf16.mxu0 %v3254_v17 }
 0x1b8   :  { %2232 = vmatpush1.bf16.msra.mxu0 %v3252_v18 }
 0x1b9   :  { %2233 = vmatprep.subr.bf16.mxu0 %v3257_v19 }
 0x1bc   :  { %2234 = vmatpush1.bf16.msra.mxu0 %v3255_v20 }
 0x1f5   :  { %v1751_v45 = vpop.f32.mrb[4].mxu1 }
 0x1f6   :  { %v2790_v26 = vadd.f32 %v1751_v45, %v276_v23  ;;  %v1753_v27 = vpop.f32.mrb[5].mxu1 }
 0x1f7   :  { %v2791_v28 = vadd.f32 %v1753_v27, %v280_v25  ;;  %v1755_v29 = vpop.f32.mrb[6].mxu1 }
 0x1f8   :  { %v1760_v30 = vmax.f32 %v2790_v26, 0.0  ;;  %v1756_v31 = vpop.f32.mrb[7].mxu1 }
 0x1f9   :  { %v1761_v32 = vmax.f32 %v2791_v28, 0.0 }
 0x1fa   :  { %v1764_v35 = vpack.c.bf16 %v1760_v30, %v1760_v30 }
 0x1fb   :  { %v1765_v33 = vpack.c.bf16 %v1761_v32, %v1761_v32 }
 0x1fd   :  { %2235 = vmatprep.mubr.bf16.mxu0 %v1765_v33 }
 0x1fe   :  { %2236 = vmatmul.mubr.bf16.vlgmr.msra.gmra.mrb[4].mxu0 %v1764_v35 }
 0x2d1   :  { %v2237_v42 = vpop.f32.mrb[4].mxu0 }
 0x2d2   :  { %v2792_v43 = vadd.f32 %v2237_v42, %v1835_v40  ;;  %v2239_v44 = vpop.f32.mrb[5].mxu0 }
 0x2d3   :  { %v2793_v46 = vadd.f32 %v2239_v44, %v1839_v41  ;;  %v2241_v47 = vpop.f32.mrb[6].mxu0 }
 0x2d4   :  { %v2244_v48 = vmax.f32 %v2792_v43, 0.0  ;;  %v2242_v49 = vpop.f32.mrb[7].mxu0 }
 0x2d5   :  { %v2245_v50 = vmax.f32 %v2793_v46, 0.0 }
 0x2d6   :  { %v2246_v53 = vpack.c.bf16 %v2244_v48, %v2244_v48 }
 0x2d7   :  { %v2247_v52 = vpack.c.bf16 %v2245_v50, %v2245_v50 }
 0x2d9   :  { %2415 = vmatprep.mubr.bf16.mxu1 %v2247_v52 }
 0x2da   :  { %2416 = vmatmul.mubr.bf16.vlgmr.msra.gmra.mrb[8].mxu1 %v2246_v53 }
 0x3ad   :  { %v2780_v34 = vpop.f32.mrb[8].mxu1 }
 0x3ae   :  { %v2781_v7 = vpop.f32.mrb[9].mxu1 }
 0x3af   :  { %v2782_v55 = vadd.f32 %v2781_v7, %v2780_v34  ;;  %v2783_v56 = vpop.f32.mrb[10].mxu1 }
 0x3b0   :  { %v2784_v57 = vpop.f32.mrb[11].mxu1 }
 0x3b1   :  { %v2418_v58 = vadd.f32 %v2782_v55, %v2745_v51 }
 0x3b3   :  { %v2423_v60 = vmax.f32 %v2418_v58, 0.0 }
 0x3b5   :  { %v2431_v61 = vmul.f32 %v2762_v59, %v2423_v60 }
 0x3b7   :  { %2432 = vadd.xlane.f32.xlu0 %v2431_v61 }
 0x444   :  { %v2433_v63 = vpop.xlane.xlu0 %2432 }
 0x445   :  { %v2441_v0 = vadd.f32 %v2763_v62, %v2433_v63 }
 0x447   :  { %3274 = vtanh.f32 %v2441_v0 }
 0x451   :  { %v3275_v1 = vpop.eup %3274 }
 0x452   :  { %v2443_v2 = vsub.f32 0.0, %v3275_v1 }
 0x454   :  { %2445 = vst.msk [vmem:[%s4334_s9] sm:$0xff] %vm2444_vm0, %v2443_v2 }

</bundles_post_ra>
